<compile_context>
chip_gen: v7x
topology: tpu7x:2x2x1
jax: 0.10.0
libtpu: 0.0.40
codegen_flags: <defaults>
</compile_context>

<pallas_src>
import numpy as np
import jax
import jax.numpy as jnp
from jax import lax
from jax.experimental import pallas as pl
from jax.experimental.pallas import tpu as pltpu


# ----------------------------------------------------------------------------
# Deterministic weight construction (pure numpy, mirrors the PyTorch buffer)
# ----------------------------------------------------------------------------
def _cubic(x):
    # Keys cubic convolution kernel, a = -0.5 (standard bicubic).
    x = np.abs(x).astype("float32")
    x2 = x * x
    x3 = x2 * x
    f = np.where(x <= 1.0, 1.5 * x3 - 2.5 * x2 + 1.0,
                 np.where(x <= 2.0, -0.5 * x3 + 2.5 * x2 - 4.0 * x + 2.0, 0.0))
    return f.astype("float32")


def cubic_up(s):
    A = np.zeros((s, 5), "float32")
    delta = 1.0 / float(s)
    k = [-(s - 1) / float(s) / 2.0]
    for _ in range(0, s - 1):
        k.append(k[-1] + delta)
    for i, b in enumerate(k[::-1]):
        B = np.array([b - 2, b - 1, b, b + 1, b + 2])
        A[i] = _cubic(B)
        A[i] /= np.sum(A[i])
    return A


def _h_operator(w_len, scale):
    """(W, W*scale) banded matrix: horizontal 5-tap bicubic filtering + column
    pixel-shuffle interleave, with ReplicationPad2d(2) clamping folded in."""
    wk = cubic_up(scale)  # (scale, 5)
    m = np.zeros((w_len, w_len * scale), np.float32)
    for x in range(w_len):
        for j in range(scale):
            for q in range(5):
                src = min(max(x + q - 2, 0), w_len - 1)
                m[src, x * scale + j] += wk[j, q]
    return m


def _v_operator(h_len, scale):
    """(H*scale, H) banded matrix: vertical 5-tap bicubic filtering + row
    pixel-shuffle interleave, with ReplicationPad2d(2) clamping folded in."""
    wk = cubic_up(scale)  # (scale, 5)
    m = np.zeros((h_len * scale, h_len), np.float32)
    for y in range(h_len):
        for i in range(scale):
            for p in range(5):
                src = min(max(y + p - 2, 0), h_len - 1)
                m[y * scale + i, src] += wk[i, p]
    return m


# ----------------------------------------------------------------------------
# Pallas kernel
# ----------------------------------------------------------------------------
def _upsample_kernel(x_ref, mh_ref, mv_ref, o_ref):
    # x_ref : (TILE_BC, H, W)              input planes (caller dtype)
    # mh_ref: (W, W*scale)  f32            horizontal band (pad + shuffle folded)
    # mv_ref: (H*scale, H)  f32            vertical band   (pad + shuffle folded)
    # o_ref : (TILE_BC, H*scale, W*scale)  final pixel-shuffled layout
    mh = mh_ref[...]
    mv = mv_ref[...]

    def one_plane(bi):
        xp = x_ref[bi].astype(jnp.float32)                       # (H, W)
        t = jnp.dot(xp, mh, precision=lax.Precision.HIGHEST,
                    preferred_element_type=jnp.float32)          # (H, W*s)
        y = jnp.dot(mv, t, precision=lax.Precision.HIGHEST,
                    preferred_element_type=jnp.float32)          # (H*s, W*s)
        o_ref[bi] = y.astype(o_ref.dtype)

    tile = x_ref.shape[0]
    if tile <= 8:
        for bi in range(tile):          # small static unroll
            one_plane(bi)
    else:
        def body(bi, carry):
            one_plane(bi)
            return carry
        lax.fori_loop(0, tile, body, 0)


def _choose_tile_bc(bc, h, w, scale, itemsize,
                    vmem_budget_bytes=12 << 20, min_grid_steps=4):
    """Largest divisor of bc such that the double-buffered in+out blocks fit a
    conservative VMEM budget (v7x: 64 MiB physical) and the grid keeps at least
    `min_grid_steps` steps so multiple TensorCores can split the plane axis."""
    per_plane = (h * w + (h * scale) * (w * scale)) * itemsize
    cap_vmem = max(1, vmem_budget_bytes // (2 * per_plane))
    cap_grid = max(1, bc // min_grid_steps)
    cap = int(max(1, min(cap_vmem, cap_grid, bc)))
    for t in range(cap, 0, -1):
        if bc % t == 0:
            return t
    return 1


def upsample_pallas(x, scale):
    assert scale in (2, 3, 4), "scale must be 2, 3, or 4!"
    b, c, h, w = x.shape
    hs, ws = h * scale, w * scale
    bc = b * c

    xr = x.reshape(bc, h, w)                    # free: merges leading dims only
    mh = jnp.asarray(_h_operator(w, scale))     # (w, ws) f32
    mv = jnp.asarray(_v_operator(h, scale))     # (hs, h) f32

    itemsize = jnp.dtype(x.dtype).itemsize
    tile_bc = _choose_tile_bc(bc, h, w, scale, itemsize)
    grid = (bc // tile_bc,)

    # Double-buffered input+output blocks + the two constant operators + slack.
    block_bytes = 2 * tile_bc * (h * w + hs * ws) * itemsize
    const_bytes = 2 * (w * ws + hs * h) * 4
    vmem_limit = int(min(max(2 * block_bytes + const_bytes + (4 << 20), 16 << 20),
                         48 << 20))

    out = pl.pallas_call(
        _upsample_kernel,
        out_shape=jax.ShapeDtypeStruct((bc, hs, ws), x.dtype),
        grid=grid,
        in_specs=[
            pl.BlockSpec((tile_bc, h, w), lambda i: (i, 0, 0)),
            pl.BlockSpec((w, ws), lambda i: (0, 0)),   # constant index -> fetched once
            pl.BlockSpec((hs, h), lambda i: (0, 0)),   # constant index -> fetched once
        ],
        out_specs=pl.BlockSpec((tile_bc, hs, ws), lambda i: (i, 0, 0)),
        compiler_params=pltpu.CompilerParams(
            dimension_semantics=("parallel",),
            vmem_limit_bytes=vmem_limit),
    )(xr, mh, mv)

    return out.reshape(b, c, hs, ws)            # free: splits leading dim only


# ----------------------------------------------------------------------------
# Independent host-side reference (float64 numpy, mirrors the PyTorch forward:
# replication pad -> 5x5 cross-correlation per phase -> pixel shuffle)
# ----------------------------------------------------------------------------
def upsample_reference_np(x_np, scale):
    b, c, h, w = x_np.shape
    s2 = scale * scale
    wk = cubic_up(scale).astype(np.float64)
    wts = np.stack([np.outer(wk[i], wk[j])
                    for i in range(scale) for j in range(scale)], 0)  # (s2,5,5)
    xr = x_np.astype(np.float64).reshape(b * c, h, w)
    xpad = np.pad(xr, ((0, 0), (2, 2), (2, 2)), mode="edge")
    out = np.zeros((b * c, s2, h, w), np.float64)
    for k in range(s2):
        for p in range(5):
            for q in range(5):
                out[:, k] += wts[k, p, q] * xpad[:, p:p + h, q:q + w]
    out = out.reshape(b, c, scale, scale, h, w).transpose(0, 1, 4, 2, 5, 3)
    return out.reshape(b, c, h * scale, w * scale).astype(np.float32)


if __name__ == "__main__":
    key = jax.random.PRNGKey(0)
    x = jax.random.normal(key, (2, 4, 16, 16), dtype=jnp.float32)

    for scale in (2, 3):
        y = upsample_pallas(x, scale)
        jax.block_until_ready(y)
        assert y.shape == (2, 4, 16 * scale, 16 * scale), y.shape
        y_ref = upsample_reference_np(np.asarray(x), scale)
        np.testing.assert_allclose(np.asarray(y), y_ref, rtol=1e-3, atol=1e-3)

    print("KERNEL_OK")
</pallas_src>

<mosaic_0001>
module attributes {stable_mosaic.version = 11 : i64} {
  func.func @_upsample_kernel(%arg0: i32, %arg1: memref<2x16x16xf32, #tpu.memory_space<vmem>>, %arg2: memref<16x32xf32, #tpu.memory_space<vmem>>, %arg3: memref<32x16xf32, #tpu.memory_space<vmem>>, %arg4: memref<2x32x32xf32, #tpu.memory_space<vmem>>) attributes {dimension_semantics = [#tpu.dimension_semantics<parallel>], iteration_bounds = array<i64: 4>, scalar_prefetch = 0 : i64, scratch_operands = 0 : i64, tpu.core_type = #tpu.core_type<tc>, window_params = [{transform_indices = @transform_0, window_bounds = array<i64: 2, 16, 16>}, {pipeline_mode = #tpu.pipeline_mode<synchronous>, transform_indices = @transform_1, window_bounds = array<i64: 16, 32>}, {pipeline_mode = #tpu.pipeline_mode<synchronous>, transform_indices = @transform_2, window_bounds = array<i64: 32, 16>}, {transform_indices = @transform_3, window_bounds = array<i64: 2, 32, 32>}]} {
    %c0 = arith.constant 0 : index
    %c0_0 = arith.constant 0 : index
    %0 = vector.load %arg2[%c0, %c0_0] : memref<16x32xf32, #tpu.memory_space<vmem>>, vector<16x32xf32>
    %c0_1 = arith.constant 0 : index
    %c0_2 = arith.constant 0 : index
    %1 = vector.load %arg3[%c0_1, %c0_2] : memref<32x16xf32, #tpu.memory_space<vmem>>, vector<32x16xf32>
    %c0_3 = arith.constant 0 : index
    %c0_4 = arith.constant 0 : index
    %c0_5 = arith.constant 0 : index
    %2 = vector.load %arg1[%c0_3, %c0_4, %c0_5] : memref<2x16x16xf32, #tpu.memory_space<vmem>>, vector<1x16x16xf32>
    %3 = vector.shape_cast %2 : vector<1x16x16xf32> to vector<16x16xf32>
    %cst = arith.constant dense<0.000000e+00> : vector<16x32xf32>
    %4 = tpu.matmul %3, %0, %cst {dimension_numbers = #tpu.dot_dimension_numbers<[1], [0], [0], [1], [0, 0, 1, 1], [], []>, precision = #tpu.contract_precision<fp32>} : vector<16x16xf32>, vector<16x32xf32>, vector<16x32xf32> -> vector<16x32xf32>
    %cst_6 = arith.constant dense<0.000000e+00> : vector<32x32xf32>
    %5 = tpu.matmul %1, %4, %cst_6 {dimension_numbers = #tpu.dot_dimension_numbers<[1], [0], [0], [1], [0, 0, 1, 1], [], []>, precision = #tpu.contract_precision<fp32>} : vector<32x16xf32>, vector<16x32xf32>, vector<32x32xf32> -> vector<32x32xf32>
    %c0_7 = arith.constant 0 : index
    %c0_8 = arith.constant 0 : index
    %c0_9 = arith.constant 0 : index
    %6 = vector.load %arg4[%c0_7, %c0_8, %c0_9] : memref<2x32x32xf32, #tpu.memory_space<vmem>>, vector<1x32x32xf32>
    %7 = vector.shape_cast %6 : vector<1x32x32xf32> to vector<32x32xf32>
    %8 = vector.shape_cast %5 : vector<32x32xf32> to vector<1x32x32xf32>
    tpu.vector_store %arg4[%c0_7, %c0_8, %c0_9], %8 {strides = array<i32>} : memref<2x32x32xf32, #tpu.memory_space<vmem>>, vector<1x32x32xf32>,
    %c1 = arith.constant 1 : index
    %c0_10 = arith.constant 0 : index
    %c0_11 = arith.constant 0 : index
    %9 = vector.load %arg1[%c1, %c0_10, %c0_11] : memref<2x16x16xf32, #tpu.memory_space<vmem>>, vector<1x16x16xf32>
    %10 = vector.shape_cast %9 : vector<1x16x16xf32> to vector<16x16xf32>
    %cst_12 = arith.constant dense<0.000000e+00> : vector<16x32xf32>
    %11 = tpu.matmul %10, %0, %cst_12 {dimension_numbers = #tpu.dot_dimension_numbers<[1], [0], [0], [1], [0, 0, 1, 1], [], []>, precision = #tpu.contract_precision<fp32>} : vector<16x16xf32>, vector<16x32xf32>, vector<16x32xf32> -> vector<16x32xf32>
    %cst_13 = arith.constant dense<0.000000e+00> : vector<32x32xf32>
    %12 = tpu.matmul %1, %11, %cst_13 {dimension_numbers = #tpu.dot_dimension_numbers<[1], [0], [0], [1], [0, 0, 1, 1], [], []>, precision = #tpu.contract_precision<fp32>} : vector<32x16xf32>, vector<16x32xf32>, vector<32x32xf32> -> vector<32x32xf32>
    %c1_14 = arith.constant 1 : index
    %c0_15 = arith.constant 0 : index
    %c0_16 = arith.constant 0 : index
    %13 = vector.load %arg4[%c1_14, %c0_15, %c0_16] : memref<2x32x32xf32, #tpu.memory_space<vmem>>, vector<1x32x32xf32>
    %14 = vector.shape_cast %13 : vector<1x32x32xf32> to vector<32x32xf32>
    %15 = vector.shape_cast %12 : vector<32x32xf32> to vector<1x32x32xf32>
    tpu.vector_store %arg4[%c1_14, %c0_15, %c0_16], %15 {strides = array<i32>} : memref<2x32x32xf32, #tpu.memory_space<vmem>>, vector<1x32x32xf32>,
    return
  }
  func.func @transform_0(%arg0: i32) -> (i32, i32, i32) {
    %c0_i32 = arith.constant 0 : i32
    %c0_i32_0 = arith.constant 0 : i32
    %c0_i32_1 = arith.constant 0 : i32
    return %arg0, %c0_i32, %c0_i32_0 : i32, i32, i32
  }
  func.func @transform_1(%arg0: i32) -> (i32, i32) {
    %c0_i32 = arith.constant 0 : i32
    %c0_i32_0 = arith.constant 0 : i32
    %c0_i32_1 = arith.constant 0 : i32
    return %c0_i32, %c0_i32_0 : i32, i32
  }
  func.func @transform_2(%arg0: i32) -> (i32, i32) {
    %c0_i32 = arith.constant 0 : i32
    %c0_i32_0 = arith.constant 0 : i32
    %c0_i32_1 = arith.constant 0 : i32
    return %c0_i32, %c0_i32_0 : i32, i32
  }
  func.func @transform_3(%arg0: i32) -> (i32, i32, i32) {
    %c0_i32 = arith.constant 0 : i32
    %c0_i32_0 = arith.constant 0 : i32
    %c0_i32_1 = arith.constant 0 : i32
    return %arg0, %c0_i32, %c0_i32_0 : i32, i32, i32
  }
}

</mosaic_0001>

<bundles_post_ra>
// kernel: tpu_custom_call.1
= control target key start
LH: loop header
LB: loop body
LE: loop exit
PB: predicated region body
PF: predicated region fallthrough
CT: control target
= control target key end

     0   :  { %8 = vsyncpa [#allocation3], 0  ;;  %s3492_s0 = inlined_call_operand.hbm [shape: f32[8,16,16], index: 0, kind: input, shape index: {}]   ;;  %s3493_s1 = inlined_call_operand.vmem [shape: f32[16,32], index: 1, kind: input, shape index: {}]   ;;  %s3494_s2 = inlined_call_operand.vmem [shape: f32[32,16], index: 2, kind: input, shape index: {}]   ;;  %s3495_s3 = inlined_call_operand.hbm [shape: f32[8,32,32], index: 3, kind: output, shape index: {}]  }
   0x1   :  { %10 = vsyncpa [#allocation3 + $0x1], 0 }
   0x2   :  { %11 = vsyncpa [#allocation4], 0 }
   0x3   :  { %13 = vsyncpa [#allocation4 + $0x1], 0  ;;  %s3186_s12 = smov 0   ;;  %s3188_s13 = smov 0  }
   0x4   :  { %s3190_s14 = smov 0   ;;  %s3192_s15 = smov 0  }
   0x5 LB: > { %s3207_s16 = sadd.s32 4294967295, %s3158_s15   ;;  %s2506_s17 = sadd.s32 4294967294, %s3158_s15   ;;  %s3158_s15 = sphi %s3192_s15, %s3507_s15   ;;  %s3154_s14 = sphi %s3190_s14, %s3506_s14   ;;  %s3150_s13 = sphi %s3188_s13, %s3505_s13   ;;  %s3146_s12 = sphi %s3186_s12, %s3504_s12  }
   0x6   : > { %s3211_s18 = sadd.s32 1, %s3158_s15   ;;  %s26_s19 = sadd.s32 1, %s3154_s14 }
   0x7   : > { %s23_s20 = ssub.s32 %s3158_s15, %s3211_s18  ;;  %p33_p0 = scmp.ne.s32.totalorder %s3154_s14, %s3150_s13 }
   0x8   : > { %p24_p1 = scmp.eq.s32.totalorder %s23_s20, 0  ;;  %p34_p2 = scmp.eq.s32.totalorder %s3158_s15, 0 }
   0x9   : > { %p39_p3 = scmp.ne.s32.totalorder %s3150_s13, %s3146_s12  ;;  %p40_p4 = scmp.eq.s32.totalorder %s3207_s16, 0 }
   0xa   : > { %s3223_s21 = scalar_select %p24_p1, %s3154_s14, %s26_s19  }
   0xb   : > { %p3225_p5 = por %p34_p2, %p33_p0  ;;  %p3229_p6 = por %p40_p4, %p39_p3 }
   0xc   : > { %p105_p7 = scmp.eq.s32.totalorder %s3207_s16, 3  ;;  %p111_p8 = scmp.eq.s32.totalorder %s2506_s17, 3 }
   0xd   : > { %p3024_p9 = scmp.lt.s32.totalorder %s3158_s15, 4  ;;  %s137_s26 = sand.u32 1, %s3154_s14  }
   0xe   : > { %p3235_p10 = por %p105_p7, %p33_p0  ;;  %p3239_p11 = por %p111_p8, %p39_p3 }
   0xf   : > { %s2529_s27 = sshll.u32 %s3158_s15, 9  ;;  %s2509_s28 = sshll.u32 %s137_s26, 5 }
  0x10   : > { %s3499_s24 = scalar_select %p3235_p10, 1, 0 }
  0x11   : > { %s3500_s25 = scalar_select %p3239_p11, 1, 0 }
  0x12   : > { %s3248_s4 = scalar_lea.hbm %s3492_s0, %s2529_s27  ;;  %s141_s5 = scalar_lea.vmem [#allocation2], %s2509_s28 }
  0x13   : > { %s149_s6 = sshll.u32 %s141_s5, 4  ;;  %p3252_p12 = pnand %p3024_p9, %p3225_p5  ;;  %s3256_s6 = int_to_ptr.vmem [resolvable:$true] %s149_s6 }
  0x14   : > { %s3258_s8 = scalar_lea.sflag [#allocation3], %s137_s26  ;;  %s3062_s9 = scalar_lea.hbm %s3248_s4, 512 }
  0x15   : > { %p3063_p13 = scmp.ne.s32.totalorder %s3248_s4, %s3062_s9  ;;  %p3064_p0 = pneg %p3252_p12 }
  0x16   : > { %s3067_s17 = scalar_lea.hbm %s3492_s0, 2048  ;;  %p3068_p3 = scmp.lt.u32.totalorder %s3248_s4, %s3492_s0 }
  0x17   : > { %p3065_p1 = pnand %p3064_p0, %p3063_p13  ;;  %p3069_p4 = scmp.lt.u32.totalorder %s3067_s17, %s3062_s9 }
  0x18   : > { %p3071_p7 = scmp.lt.u32.totalorder %s3062_s9, %s3248_s4 }
  0x19   : > { %p3066_p2 = pneg %p3065_p1  ;;  %p3070_p5 = por %p3069_p4, %p3068_p3 }
  0x1b   : > { %p3072_p8 = por %p3071_p7, %p3070_p5 }
  0x1d   : > { %p3073_p9 = pnand %p3072_p8, %p3066_p2 }
  0x1f   : > { %3076 = shalt.err (!%p3073_p9)
}
  0x20   : > { %s3077_s22 = scalar_lea.vmem %s3256_s6, 512  ;;  %s3160_s26 = smov [#allocation2]  }
  0x21   : > { %p3078_p13 = scmp.ne.s32.totalorder %s3256_s6, %s3077_s22  ;;  %s3082_s27 = sshll.u32 %s3160_s26, 4  ;;  %s3083_s27 = int_to_ptr.vmem [resolvable:$false] %s3082_s27 }
  0x22   : > { %s3084_s28 = scalar_lea.vmem %s3083_s27, 1024  ;;  %p3085_p10 = scmp.lt.s32.totalorder %s3256_s6, %s3083_s27 }
  0x23   : > { %p3080_p1 = pnand %p3078_p13, %p3064_p0  ;;  %p3086_p3 = scmp.lt.s32.totalorder %s3084_s28, %s3077_s22 }
  0x25   : > { %p3081_p11 = pneg %p3080_p1  ;;  %p3087_p4 = por %p3086_p3, %p3085_p10 }
  0x27   : > { %p3088_p5 = pnand %p3087_p4, %p3081_p11 }
  0x29   : > { %3091 = shalt.err (!%p3088_p5)
}
  0x2a   : > { %s3161_s29 = smov 128   ;;  %s3162_s30 = smov 8  }
  0x2b   : > { %3019 = dma.hbm_to_vmem [thread:$0]  (!%p3252_p12), %s3248_s4, 512, %s3256_s6, %s3258_s8, %s3161_s29, %s3161_s29, %s3162_s30  }
  0x2c   : > { %p2513_p0 = scmp.ge.s32.totalorder %s3158_s15, 1  ;;  %p157_p2 = scmp.lt.s32.totalorder %s3158_s15, 5 }
  0x2e   : > { %p158_p7 = pnand %p2513_p0, %p157_p2 }
  0x2f   : > { %s3289_s5 = sand.u32 (!%p158_p7), 1, %s3150_s13  }
  0x30   : > { %161 = sbr.rel (%p158_p7) target bundleno = 629 (0x275), region = 32  ;;  %s2514_s9 = sshll.u32 (!%p158_p7), %s3289_s5, 5 }
  0x31   : > { %s164_s10 = scalar_lea.sflag (!%p158_p7), [#allocation3], %s3289_s5  ;;  %s3293_s11 = scalar_lea.vmem (!%p158_p7), [#allocation2], %s2514_s9 }
  0x37   : > { %3137 = dma.done.wait (%p3229_p6), %s164_s10, 512  }
  0x38   : > { %3139 = vsyncadd (%p3229_p6), %s164_s10, 4294966784  ;;  %vm200_vm0 = vcmask 130048   ;;  %v192_v0 = vld [vmem:[%s3493_s1] sm:$0xff]  ;;  %v193_v1 = vld [vmem:[%s3493_s1 + $0x8] sm:$0xff]  ;;  %s2515_s29 = sshll.u32 %s3289_s5, 6  ;;  %vm1309_vm1 = vcmask 261120  }
  0x39   : > { %v198_v2 = vld [vmem:[%s3293_s11] sm:$0xff]  ;;  %v208_v3 = vand.u32 4294901760, %v192_v0  ;;  %v211_v4 = vand.u32 4294901760, %v193_v1  ;;  %v199_v6 = vld [vmem:[%s3293_s11 + $0x8] sm:$0xff]  ;;  %v2516_v30 = vld [vmem:[%s3293_s11 + $0x10] sm:$0xff]  ;;  %s189_s30 = scalar_lea.vmem [#allocation5], %s2515_s29 }
  0x3a   : > { %v202_v5 = vsel %vm200_vm0, %v198_v2, 0  ;;  %v205_v8 = vsel %vm200_vm0, %v199_v6, 0  ;;  %v1318_v31 = vsel %vm200_vm0, %v2516_v30, 0  ;;  %v2517_v32 = vld [vmem:[%s3293_s11 + $0x18] sm:$0xff]  ;;  %v194_v44 = vld [vmem:[%s3494_s2] sm:$0xff]  ;;  %v195_v51 = vld [vmem:[%s3494_s2 + $0x8] sm:$0xff] }
  0x3b   : > { %v274_v7 = vand.u32 4294901760, %v202_v5  ;;  %v3309_v9 = vpack.c.bf16 %v211_v4, %v208_v3  ;;  %v284_v10 = vand.u32 4294901760, %v205_v8  ;;  %v296_v11 = vsub.f32 %v192_v0, %v208_v3  ;;  %v196_v52 = vld [vmem:[%s3494_s2 + $0x10] sm:$0xff]  ;;  %v197_v55 = vld [vmem:[%s3494_s2 + $0x18] sm:$0xff]  ;;  %s2433_s9 = sshll.u32 %s189_s30, 4  ;;  %s2531_s10 = sshll.u32 %s3207_s16, 10  ;;  %s3441_s9 = int_to_ptr.vmem [resolvable:$true] %s2433_s9 }
  0x3c   : > { %v303_v12 = vsub.f32 %v193_v1, %v211_v4  ;;  %v1390_v33 = vand.u32 4294901760, %v1318_v31  ;;  %v1321_v34 = vsel %vm200_vm0, %v2517_v32, 0  ;;  %v710_v45 = vsel %vm200_vm0, %v194_v44, 0  ;;  %s3447_s6 = scalar_lea.hbm %s3495_s3, %s2531_s10  ;;  %s2419_s16 = scalar_lea.sflag [#allocation4], %s3289_s5 }
  0x3d   : > { %v275_v13 = vsub.f32 %v202_v5, %v274_v7  ;;  %2857 = vmatprep.subr.bf16.mxu0 %v3309_v9  ;;  %v285_v14 = vsub.f32 %v205_v8, %v284_v10  ;;  %v297_v15 = vand.u32 4294901760, %v296_v11  ;;  %v1400_v35 = vand.u32 4294901760, %v1321_v34  ;;  %s3092_s7 = scalar_lea.vmem %s3441_s9, 1024  ;;  %p3502_p10 = scmp.ne.s32.totalorder %s3499_s24, 0 }
  0x3e   : > { %v304_v16 = vand.u32 4294901760, %v303_v12  ;;  %2859 = vmatpush3.bf16.msra.mxu0 %v3309_v9  ;;  %v2864_v28 = vpack.c.bf16 %v303_v12, %v296_v11  ;;  %v1391_v36 = vsub.f32 %v1318_v31, %v1390_v33  ;;  %v3331_v46 = vand.u32 4294901760, %v710_v45  ;;  %p3093_p6 = scmp.ne.s32.totalorder %s3441_s9, %s3092_s7  ;;  %s3163_s8 = smov [#allocation5]  }
  0x3f   : > { %v276_v17 = vand.u32 4294901760, %v275_v13  ;;  %v286_v18 = vand.u32 4294901760, %v285_v14  ;;  %v298_v19 = vsub.f32 %v296_v11, %v297_v15  ;;  %v1401_v37 = vsub.f32 %v1321_v34, %v1400_v35  ;;  %s3096_s23 = sshll.u32 %s3163_s8, 4  ;;  %s3097_s23 = int_to_ptr.vmem [resolvable:$false] %s3096_s23 }
  0x40   : > { %v305_v20 = vsub.f32 %v303_v12, %v304_v16  ;;  %v2872_v29 = vpack.c.bf16 %v304_v16, %v297_v15  ;;  %v1392_v38 = vand.u32 4294901760, %v1391_v36  ;;  %v3334_v47 = vsub.f32 %v710_v45, %v3331_v46  ;;  %p3094_p11 = pnand %p3093_p6, %p3502_p10  ;;  %s3098_s17 = scalar_lea.vmem %s3097_s23, 2048 }
  0x41   : > { %v277_v21 = vsub.f32 %v275_v13, %v276_v17  ;;  %v287_v22 = vsub.f32 %v285_v14, %v286_v18  ;;  %v299_v23 = vand.u32 4294901760, %v298_v19  ;;  %v1402_v39 = vand.u32 4294901760, %v1401_v37  ;;  %p3099_p8 = scmp.lt.s32.totalorder %s3441_s9, %s3097_s23  ;;  %p3100_p9 = scmp.lt.s32.totalorder %s3098_s17, %s3092_s7 }
  0x42   : > { %v306_v24 = vand.u32 4294901760, %v305_v20  ;;  %v1393_v40 = vsub.f32 %v1391_v36, %v1392_v38  ;;  %v790_v48 = vand.u32 4294901760, %v3334_v47  ;;  %v713_v53 = vsel %vm200_vm0, %v195_v51, 0  ;;  %p3095_p12 = pneg %p3094_p11 }
  0x43   : > { %v278_v25 = vand.u32 4294901760, %v277_v21  ;;  %v288_v26 = vand.u32 4294901760, %v287_v22  ;;  %v1403_v41 = vsub.f32 %v1401_v37, %v1402_v39  ;;  %v716_v54 = vsel %vm200_vm0, %v196_v52, 0  ;;  %p3101_p13 = por %p3100_p9, %p3099_p8 }
  0x44   : > { %v2860_v27 = vpack.c.bf16 %v306_v24, %v299_v23  ;;  %v1394_v42 = vand.u32 4294901760, %v1393_v40  ;;  %v791_v49 = vsub.f32 %v3334_v47, %v790_v48  ;;  %v3352_v56 = vand.u32 4294901760, %v713_v53 }
  0x45   : > { %2656 = vmatprep.mubr.f32.mxu0 %v278_v25  ;;  %v1404_v43 = vand.u32 4294901760, %v1403_v41  ;;  %v3354_v57 = vand.u32 4294901760, %v716_v54  ;;  %v719_v58 = vsel %vm200_vm0, %v197_v55, 0  ;;  %p3102_p1 = pnand %p3101_p13, %p3095_p12 }
  0x46   : > { %2657 = vmatmul.mubr.f32.vlgmr.msra.gmra.mrb[0].mxu0 %v288_v26  ;;  %2861 = vmatprep.subr.bf16.mxu0 %v2860_v27  ;;  %v3338_v50 = vand.u32 4294901760, %v791_v49  ;;  %v3358_v59 = vsub.f32 %v713_v53, %v3352_v56  ;;  %v3360_v60 = vand.u32 4294901760, %v719_v58 }
  0x47   : > { %2863 = vmatpush3.bf16.msra.mxu0 %v2860_v27  ;;  %2663 = vmatprep.mubr.f32.mxu0 %v274_v7  ;;  %v3363_v61 = vsub.f32 %v716_v54, %v3354_v57 }
  0x48   : > { %2865 = vmatprep.subr.bf16.mxu0 %v2864_v28  ;;  %2698 = vmatprep.mubr.f32.mxu1 %v3338_v50  ;;  %v3366_v62 = vand.u32 4294901760, %v3358_v59  ;;  %v3369_v63 = vsub.f32 %v719_v58, %v3360_v60 }
  0x49   : > { %v3372_v0 = vand.u32 4294901760, %v3363_v61 }
  0x4a   : > { %v801_v5 = vsub.f32 %v3358_v59, %v3366_v62  ;;  %v3377_v6 = vand.u32 4294901760, %v3369_v63 }
  0x4b   : > { %v811_v8 = vsub.f32 %v3363_v61, %v3372_v0 }
  0x4e   : > { %2664 = vmatmul.mubr.f32.vlgmr.msra.gmra.mrb[0].mxu0 %v284_v10 }
  0x4f   : > { %2867 = vmatpush3.bf16.msra.mxu0 %v2864_v28  ;;  %2670 = vmatprep.mubr.f32.mxu0 %v275_v13  ;;  %v3381_v13 = vand.u32 4294901760, %v801_v5 }
  0x50   : > { %2869 = vmatprep.subr.bf16.mxu0 %v3309_v9 }
  0x56   : > { %2671 = vmatmul.mubr.f32.vlgmr.msra.gmra.mrb[0].mxu0 %v285_v14  ;;  %v821_v14 = vsub.f32 %v3369_v63, %v3377_v6 }
  0x57   : > { %2871 = vmatpush3.bf16.msra.mxu0 %v3309_v9  ;;  %2677 = vmatprep.mubr.f32.mxu0 %v276_v17  ;;  %v3385_v17 = vand.u32 4294901760, %v811_v8 }
  0x58   : > { %2873 = vmatprep.subr.bf16.mxu0 %v2872_v29  ;;  %v3388_v21 = vand.u32 4294901760, %v821_v14 }
  0x5e   : > { %2678 = vmatmul.mubr.f32.vlgmr.msra.gmra.mrb[0].mxu0 %v286_v18 }
  0x5f   : > { %2875 = vmatpush3.bf16.msra.mxu0 %v2872_v29  ;;  %2684 = vmatprep.mubr.f32.mxu0 %v274_v7 }
  0x60   : > { %2877 = vmatprep.subr.bf16.mxu0 %v3309_v9 }
  0x66   : > { %2685 = vmatmul.mubr.f32.vlgmr.msra.gmra.mrb[0].mxu0 %v284_v10 }
  0x67   : > { %2879 = vmatpush3.bf16.msra.mxu0 %v3309_v9  ;;  %2691 = vmatprep.mubr.f32.mxu0 %v274_v7 }
  0x68   : > { %2905 = vmatprep.subr.bf16.mxu0 %v3309_v9 }
  0x6e   : > { %2692 = vmatmul.mubr.f32.vlgmr.msra.gmra.mrb[0].mxu0 %v284_v10 }
  0x6f   : > { %2907 = vmatpush3.bf16.msra.mxu0 %v3309_v9  ;;  %2758 = vmatprep.mubr.f32.mxu0 %v1394_v42 }
  0x70   : > { %2909 = vmatprep.subr.bf16.mxu0 %v2860_v27 }
  0x72   : > { %2759 = vmatmul.mubr.f32.vlgmr.msra.gmra.mrb[2].mxu0 %v1404_v43 }
  0x73   : > { %2911 = vmatpush3.bf16.msra.mxu0 %v2860_v27  ;;  %2765 = vmatprep.mubr.f32.mxu0 %v1390_v33 }
  0x74   : > { %2913 = vmatprep.subr.bf16.mxu0 %v2864_v28 }
  0x7a   : > { %2766 = vmatmul.mubr.f32.vlgmr.msra.gmra.mrb[2].mxu0 %v1400_v35 }
  0x7b   : > { %2915 = vmatpush3.bf16.msra.mxu0 %v2864_v28  ;;  %2772 = vmatprep.mubr.f32.mxu0 %v1391_v36 }
  0x7c   : > { %2917 = vmatprep.subr.bf16.mxu0 %v3309_v9 }
  0x82   : > { %2773 = vmatmul.mubr.f32.vlgmr.msra.gmra.mrb[2].mxu0 %v1401_v37 }
  0x83   : > { %2919 = vmatpush3.bf16.msra.mxu0 %v3309_v9  ;;  %2779 = vmatprep.mubr.f32.mxu0 %v1392_v38 }
  0x84   : > { %2921 = vmatprep.subr.bf16.mxu0 %v2872_v29 }
  0x8a   : > { %2780 = vmatmul.mubr.f32.vlgmr.msra.gmra.mrb[2].mxu0 %v1402_v39 }
  0x8b   : > { %2923 = vmatpush3.bf16.msra.mxu0 %v2872_v29  ;;  %2786 = vmatprep.mubr.f32.mxu0 %v1390_v33 }
  0x8c   : > { %2925 = vmatprep.subr.bf16.mxu0 %v3309_v9 }
  0x92   : > { %2787 = vmatmul.mubr.f32.vlgmr.msra.gmra.mrb[2].mxu0 %v1400_v35 }
  0x93   : > { %2927 = vmatpush3.bf16.msra.mxu0 %v3309_v9  ;;  %2793 = vmatprep.mubr.f32.mxu0 %v1390_v33 }
  0x9a   : > { %2794 = vmatmul.mubr.f32.vlgmr.msra.gmra.mrb[2].mxu0 %v1400_v35 }
  0x9b   : > { %2830 = vmatprep.mubr.f32.mxu0 %v790_v48 }
 0x141   : > { %v2693_v1 = vpop.f32.mrb[0].mxu0 }
 0x142   : > { %v725_v2 = vand.u32 4294901760, %v2693_v1  ;;  %v699_v3 = vpop.f32.mrb[1].mxu0 }
 0x143   : > { %v722_v4 = vand.u32 4294901760, %v699_v3 }
 0x144   : > { %v837_v7 = vsub.f32 %v2693_v1, %v725_v2 }
 0x145   : > { %v2880_v9 = vpack.c.bf16 %v725_v2, %v722_v4  ;;  %v830_v10 = vsub.f32 %v699_v3, %v722_v4 }
 0x146   : > { %v838_v11 = vand.u32 4294901760, %v837_v7 }
 0x147   : > { %v831_v12 = vand.u32 4294901760, %v830_v10  ;;  %2881 = vmatprep.subr.bf16.mxu1 %v2880_v9  ;;  %v2888_v15 = vpack.c.bf16 %v837_v7, %v830_v10 }
 0x148   : > { %v839_v16 = vsub.f32 %v837_v7, %v838_v11  ;;  %2883 = vmatpush3.bf16.msra.mxu1 %v2880_v9 }
 0x149   : > { %v832_v18 = vsub.f32 %v830_v10, %v831_v12  ;;  %v2896_v19 = vpack.c.bf16 %v838_v11, %v831_v12 }
 0x14a   : > { %v840_v20 = vand.u32 4294901760, %v839_v16 }
 0x14b   : > { %2699 = vmatmul.mubr.f32.vlgmr.msra.gmra.mrb[0].mxu1 %v3381_v13  ;;  %v833_v22 = vand.u32 4294901760, %v832_v18 }
 0x14c   : > { %2701 = vmatprep.mubr.f32.mxu1 %v3385_v17 }
 0x14d   : > { %v2884_v23 = vpack.c.bf16 %v840_v20, %v833_v22 }
 0x14f   : > { %2702 = vmatmul.mubr.f32.gmra.mrb[2].mxu1 %v3388_v21  ;;  %2885 = vmatprep.subr.bf16.mxu1 %v2884_v23 }
 0x150   : > { %2887 = vmatpush3.bf16.msra.mxu1 %v2884_v23  ;;  %2708 = vmatprep.mubr.f32.mxu1 %v3331_v46 }
 0x151   : > { %2889 = vmatprep.subr.bf16.mxu1 %v2888_v15 }
 0x153   : > { %2709 = vmatmul.mubr.f32.vlgmr.msra.gmra.mrb[0].mxu1 %v3352_v56 }
 0x154   : > { %2891 = vmatpush3.bf16.msra.mxu1 %v2888_v15  ;;  %2711 = vmatprep.mubr.f32.mxu1 %v3354_v57 }
 0x155   : > { %2893 = vmatprep.subr.bf16.mxu1 %v2880_v9 }
 0x157   : > { %2712 = vmatmul.mubr.f32.gmra.mrb[2].mxu1 %v3360_v60 }
 0x158   : > { %2718 = vmatprep.mubr.f32.mxu1 %v3334_v47 }
 0x15b   : > { %2719 = vmatmul.mubr.f32.vlgmr.msra.gmra.mrb[0].mxu1 %v3358_v59 }
 0x15c   : > { %2895 = vmatpush3.bf16.msra.mxu1 %v2880_v9  ;;  %2721 = vmatprep.mubr.f32.mxu1 %v3363_v61 }
 0x15d   : > { %2897 = vmatprep.subr.bf16.mxu1 %v2896_v19 }
 0x15f   : > { %2722 = vmatmul.mubr.f32.gmra.mrb[2].mxu1 %v3369_v63 }
 0x160   : > { %2728 = vmatprep.mubr.f32.mxu1 %v790_v48 }
 0x163   : > { %2729 = vmatmul.mubr.f32.vlgmr.msra.gmra.mrb[0].mxu1 %v3366_v62 }
 0x164   : > { %2899 = vmatpush3.bf16.msra.mxu1 %v2896_v19  ;;  %2731 = vmatprep.mubr.f32.mxu1 %v3372_v0 }
 0x165   : > { %2901 = vmatprep.subr.bf16.mxu1 %v2880_v9 }
 0x167   : > { %2732 = vmatmul.mubr.f32.gmra.mrb[2].mxu1 %v3377_v6 }
 0x168   : > { %2738 = vmatprep.mubr.f32.mxu1 %v3331_v46 }
 0x16b   : > { %2739 = vmatmul.mubr.f32.vlgmr.msra.gmra.mrb[0].mxu1 %v3352_v56 }
 0x16c   : > { %2903 = vmatpush3.bf16.msra.mxu1 %v2880_v9  ;;  %2741 = vmatprep.mubr.f32.mxu1 %v3354_v57 }
 0x16d   : > { %v2795_v24 = vpop.f32.mrb[2].mxu0 }
 0x16e   : > { %v1829_v25 = vand.u32 4294901760, %v2795_v24  ;;  %v1815_v26 = vpop.f32.mrb[3].mxu0 }
 0x16f   : > { %v1826_v27 = vand.u32 4294901760, %v1815_v26  ;;  %2742 = vmatmul.mubr.f32.gmra.mrb[2].mxu1 %v3360_v60 }
 0x170   : > { %v1941_v28 = vsub.f32 %v2795_v24, %v1829_v25  ;;  %2748 = vmatprep.mubr.f32.mxu1 %v3331_v46 }
 0x171   : > { %v2928_v29 = vpack.c.bf16 %v1829_v25, %v1826_v27  ;;  %v1934_v30 = vsub.f32 %v1815_v26, %v1826_v27 }
 0x172   : > { %v1942_v31 = vand.u32 4294901760, %v1941_v28 }
 0x173   : > { %2749 = vmatmul.mubr.f32.vlgmr.msra.gmra.mrb[0].mxu1 %v3352_v56  ;;  %2929 = vmatprep.subr.bf16.mxu1 %v2928_v29  ;;  %v1935_v32 = vand.u32 4294901760, %v1934_v30  ;;  %v2936_v33 = vpack.c.bf16 %v1941_v28, %v1934_v30 }
 0x174   : > { %2941 = vmatprep.subr.bf16.mxu0 %v2928_v29  ;;  %2931 = vmatpush3.bf16.msra.mxu1 %v2928_v29  ;;  %v1943_v34 = vsub.f32 %v1941_v28, %v1942_v31 }
 0x175   : > { %2943 = vmatpush3.bf16.msra.mxu0 %v2928_v29  ;;  %2751 = vmatprep.mubr.f32.mxu1 %v3354_v57  ;;  %v2944_v35 = vpack.c.bf16 %v1942_v31, %v1935_v32  ;;  %v1936_v36 = vsub.f32 %v1934_v30, %v1935_v32 }
 0x176   : > { %v1944_v37 = vand.u32 4294901760, %v1943_v34 }
 0x177   : > { %2752 = vmatmul.mubr.f32.gmra.mrb[2].mxu1 %v3360_v60  ;;  %2945 = vmatprep.subr.bf16.mxu0 %v2944_v35  ;;  %v1937_v38 = vand.u32 4294901760, %v1936_v36 }
 0x178   : > { %2831 = vmatmul.mubr.f32.vlgmr.msra.gmra.mrb[4].mxu0 %v3366_v62  ;;  %2800 = vmatprep.mubr.f32.mxu1 %v3338_v50 }
 0x179   : > { %2947 = vmatpush3.bf16.msra.mxu0 %v2944_v35  ;;  %2833 = vmatprep.mubr.f32.mxu0 %v3372_v0  ;;  %v2932_v39 = vpack.c.bf16 %v1944_v37, %v1937_v38 }
 0x17a   : > { %2949 = vmatprep.subr.bf16.mxu0 %v2928_v29 }
 0x17b   : > { %2801 = vmatmul.mubr.f32.vlgmr.msra.gmra.mrb[4].mxu1 %v3381_v13  ;;  %2933 = vmatprep.subr.bf16.mxu1 %v2932_v39 }
 0x17c   : > { %2834 = vmatmul.mubr.f32.gmra.mrb[6].mxu0 %v3377_v6  ;;  %2935 = vmatpush3.bf16.msra.mxu1 %v2932_v39 }
 0x17d   : > { %2937 = vmatprep.subr.bf16.mxu1 %v2936_v33  ;;  %2803 = vmatprep.mubr.f32.mxu1 %v3385_v17 }
 0x17e   : > { %2840 = vmatprep.mubr.f32.mxu0 %v3331_v46 }
 0x17f   : > { %2804 = vmatmul.mubr.f32.gmra.mrb[6].mxu1 %v3388_v21 }
 0x180   : > { %2841 = vmatmul.mubr.f32.vlgmr.msra.gmra.mrb[4].mxu0 %v3352_v56  ;;  %2810 = vmatprep.mubr.f32.mxu1 %v3331_v46 }
 0x181   : > { %2951 = vmatpush3.bf16.msra.mxu0 %v2928_v29  ;;  %2843 = vmatprep.mubr.f32.mxu0 %v3354_v57 }
 0x183   : > { %2811 = vmatmul.mubr.f32.vlgmr.msra.gmra.mrb[4].mxu1 %v3352_v56 }
 0x184   : > { %2939 = vmatpush3.bf16.msra.mxu1 %v2936_v33  ;;  %2844 = vmatmul.mubr.f32.gmra.mrb[6].mxu0 %v3360_v60 }
 0x185   : > { %2813 = vmatprep.mubr.f32.mxu1 %v3354_v57  ;;  %2850 = vmatprep.mubr.f32.mxu0 %v3331_v46 }
 0x187   : > { %2814 = vmatmul.mubr.f32.gmra.mrb[6].mxu1 %v3360_v60 }
 0x188   : > { %2851 = vmatmul.mubr.f32.vlgmr.msra.gmra.mrb[4].mxu0 %v3352_v56  ;;  %2820 = vmatprep.mubr.f32.mxu1 %v3334_v47 }
 0x189   : > { %2853 = vmatprep.mubr.f32.mxu0 %v3354_v57 }
 0x18b   : > { %2821 = vmatmul.mubr.f32.vlgmr.msra.gmra.mrb[4].mxu1 %v3358_v59 }
 0x18c   : > { %2854 = vmatmul.mubr.f32.gmra.mrb[6].mxu0 %v3360_v60  ;;  %2823 = vmatprep.mubr.f32.mxu1 %v3363_v61 }
 0x18f   : > { %2824 = vmatmul.mubr.f32.gmra.mrb[6].mxu1 %v3369_v63 }
 0x246   : > { %v2750_v40 = vpop.f32.mrb[0].mxu1 }
 0x247   : > { %1311 = vst.msk [vmem:[%s189_s30 + $0x8] sm:$0xff] %vm1309_vm1, %v2750_v40  ;;  %v1287_v41 = vpop.f32.mrb[1].mxu1 }
 0x248   : > { %1310 = vst.msk [vmem:[%s189_s30] sm:$0xff] %vm1309_vm1, %v1287_v41 }
 0x24a   : > { %v2753_v42 = vpop.f32.mrb[2].mxu1 }
 0x24b   : > { %1313 = vst.msk [vmem:[%s189_s30 + $0x18] sm:$0xff] %vm1309_vm1, %v2753_v42  ;;  %v1299_v43 = vpop.f32.mrb[3].mxu1 }
 0x24c   : > { %1312 = vst.msk [vmem:[%s189_s30 + $0x10] sm:$0xff] %vm1309_vm1, %v1299_v43 }
 0x25b   : > { %v2852_v44 = vpop.f32.mrb[4].mxu0 }
 0x25c   : > { %v2391_v45 = vpop.f32.mrb[5].mxu0 }
 0x25e   : > { %v2822_v46 = vpop.f32.mrb[4].mxu1 }
 0x25f   : > { %v2952_v47 = vadd.f32 %v2852_v44, %v2822_v46  ;;  %v2855_v48 = vpop.f32.mrb[6].mxu0  ;;  %v2103_v49 = vpop.f32.mrb[5].mxu1 }
 0x260   : > { %v2953_v50 = vadd.f32 %v2391_v45, %v2103_v49  ;;  %v2403_v51 = vpop.f32.mrb[7].mxu0 }
 0x261   : > { %2519 = vst.msk [vmem:[%s189_s30 + $0x28] sm:$0xff] %vm1309_vm1, %v2952_v47 }
 0x262   : > { %2518 = vst.msk [vmem:[%s189_s30 + $0x20] sm:$0xff] %vm1309_vm1, %v2953_v50  ;;  %v2825_v52 = vpop.f32.mrb[6].mxu1 }
 0x263   : > { %v2954_v53 = vadd.f32 %v2855_v48, %v2825_v52  ;;  %v2117_v54 = vpop.f32.mrb[7].mxu1 }
 0x264   : > { %v2955_v55 = vadd.f32 %v2403_v51, %v2117_v54 }
 0x265   : > { %2521 = vst.msk [vmem:[%s189_s30 + $0x38] sm:$0xff] %vm1309_vm1, %v2954_v53 }
 0x266   : > { %2520 = vst.msk [vmem:[%s189_s30 + $0x30] sm:$0xff] %vm1309_vm1, %v2955_v55 }
 0x267   : > { %3105 = shalt.err (!%p3102_p1)
}
 0x268   : > { %s3106_s19 = scalar_lea.hbm %s3447_s6, 1024  ;;  %s3110_s26 = scalar_lea.hbm %s3495_s3, 4096 }
 0x269   : > { %p3107_p3 = scmp.ne.s32.totalorder %s3447_s6, %s3106_s19  ;;  %p3111_p0 = scmp.lt.u32.totalorder %s3447_s6, %s3495_s3 }
 0x26a   : > { %p3112_p2 = scmp.lt.u32.totalorder %s3110_s26, %s3106_s19  ;;  %p3114_p6 = scmp.lt.u32.totalorder %s3106_s19, %s3447_s6 }
 0x26b   : > { %p3108_p4 = pnand %p3107_p3, %p3502_p10 }
 0x26c   : > { %p3113_p7 = por %p3112_p2, %p3111_p0 }
 0x26d   : > { %p3109_p5 = pneg %p3108_p4 }
 0x26e   : > { %p3115_p11 = por %p3114_p6, %p3113_p7 }
 0x270   : > { %p3116_p12 = pnand %p3115_p11, %p3109_p5 }
 0x272   : > { %3119 = shalt.err (!%p3116_p12)
}
 0x273   : > { %s3164_s29 = smov 128   ;;  %s3165_s30 = smov 8  }
 0x274   : > { %3014 = dma.vmem_to_hbm [thread:$0]  (%p3502_p10), %s3441_s9, 1024, %s3447_s6, %s2419_s16, %s3164_s29, %s3164_s29, %s3165_s30  }
 0x275 PF: > { %p3025_p8 = scmp.ge.s32.totalorder %s3158_s15, 2  ;;  %s2448_s10 = sand.u32 1, %s3146_s12  }
 0x276   : > { %p3503_p9 = scmp.ne.s32.totalorder %s3500_s25, 0  ;;  %s2449_s11 = scalar_lea.sflag [#allocation4], %s2448_s10 }
 0x278   : > { %p3021_p13 = pnand %p3025_p8, %p3503_p9 }
 0x27a   : > { %3141 = dma.done.wait (!%p3021_p13), %s2449_s11, 1024  }
 0x27b   : > { %3143 = vsyncadd (!%p3021_p13), %s2449_s11, 4294966272  ;;  %p16_p1 = scmp.ge.s32.totalorder %s3211_s18, 6   ;;  %s3504_s12 = smov %s3150_s13 }
 0x27c   : > { %s3505_s13 = smov %s3154_s14  ;;  %s3506_s14 = smov %s3223_s21 }
 0x27d   : > { %s3507_s15 = smov %s3211_s18  ;;  %18 = sbr.rel (!%p16_p1) target bundleno = 5 (0x5), region = 79 }
 0x284   :  { %2454 = vsyncpa [#allocation3], 1 }
 0x285   :  { %2456 = vsyncpa [#allocation3 + $0x1], 1 }
 0x286   :  { %2457 = vsyncpa [#allocation4], 1 }
 0x287   :  { %2459 = vsyncpa [#allocation4 + $0x1], 1 }

</bundles_post_ra>
